<compile_context>
chip_gen: v5e
topology: v5e:2x2
jax: 0.10.0
libtpu: 0.0.40
codegen_flags: <defaults>
</compile_context>

<pallas_src>
import math

import numpy as np
import jax
import jax.numpy as jnp
from jax.experimental import pallas as pl
from jax.experimental.pallas import tpu as pltpu


# ----------------------------------------------------------------------------
# Pallas kernel.  Grid = (batch_blocks, k_blocks); k (contraction over label
# nodes) is last and marked 'arbitrary', batch blocks are 'parallel'.
# ----------------------------------------------------------------------------
def hierarchy_gcn_kernel(h_ref, adj_ref, bias_ref, gw_ref, gb_ref, bcast_ref,
                         o_ref, acc_ref):
    """
    h_ref     : (N_pad, Bt*D)    label features for this batch block (mxu dtype)
    adj_ref   : (2*N_pad, Nk)    k-th contraction slice of fused [A_in ; A_out]
    bias_ref  : (2*N_pad, D)     [b_in ; b_out] edge biases (f32, un-replicated)
    gw_ref    : (Bt*D, 3*Bt)     batch-block-diagonal compact gate weights
    gb_ref    : (N_pad, 3*Bt)    compact gate biases (f32)
    bcast_ref : (3*Bt, 3*Bt*D)   constant 0/1 lane-broadcast matrix (f32)
    o_ref     : (N_pad, Bt*D)    output (f32), resident across the k axis
    acc_ref   : (2*N_pad, Bt*D)  f32 scratch accumulator for the aggregation
    """
    k = pl.program_id(1)
    nk = adj_ref.shape[1]
    n_pad = h_ref.shape[0]
    bd = h_ref.shape[1]
    d = bias_ref.shape[1]

    @pl.when(k == 0)
    def _init():
        acc_ref[...] = jnp.zeros_like(acc_ref)

    # Fused top-down + bottom-up aggregation: one (2*N_pad, Nk) @ (Nk, Bt*D)
    # MXU matmul per k step, accumulated in f32.
    row0 = pl.multiple_of(k * nk, nk)
    h_k = h_ref[pl.ds(row0, nk), :]
    acc_ref[...] += jnp.dot(adj_ref[...], h_k, preferred_element_type=jnp.float32)

    @pl.when(k == pl.num_programs(1) - 1)
    def _finalize():
        h = h_ref[...]
        h32 = h.astype(jnp.float32)

        # Compact gate pre-activations (N_pad, 3*Bt): block-diagonal in batch
        # only (no D-lane pre-broadcast), so gate MXU FLOPs/VMEM stay tiny.
        pre = jnp.dot(h, gw_ref[...], preferred_element_type=jnp.float32) + gb_ref[...]
        sig = jax.nn.sigmoid(pre)
        # Broadcast each gate across its D feature lanes with a constant 0/1
        # matmul (exact, tiny FLOPs, output stays lane-dense and 128-aligned).
        gates = jnp.dot(sig, bcast_ref[...], preferred_element_type=jnp.float32)

        # Edge biases tiled across the Bt batch segments in-kernel; the HBM/VMEM
        # operand stays (2N, D) instead of a Bt-replicated slab.
        n_rep = bd // d
        bias = bias_ref[...].astype(jnp.float32)
        bias_t = bias if n_rep == 1 else jnp.concatenate([bias] * n_rep, axis=1)

        agg = acc_ref[...] + bias_t
        msg = (agg[:n_pad, :] * gates[:, 0 * bd:1 * bd]      # top-down  (in)
               + agg[n_pad:, :] * gates[:, 1 * bd:2 * bd]    # bottom-up (out)
               + h32 * gates[:, 2 * bd:3 * bd])              # self loop
        # TODO(synk): training-mode dropout (p>0) omitted; eval dropout = identity.
        o_ref[...] = jnp.maximum(msg, 0.0).astype(o_ref.dtype)


# ----------------------------------------------------------------------------
# One-time parameter preparation (outside the per-step forward).
# ----------------------------------------------------------------------------
def _round_up(x, m):
    return ((x + m - 1) // m) * m


def prepare_structure_params(adj_in, adj_out, bias_in, bias_out, gate_w, gate_b,
                             batch, *, batch_block=None, k_block=None,
                             mxu_dtype=jnp.float32):
    """Build the constant kernel operands ONCE (not per forward call).

    adj_in/adj_out : (N, N) row-normalized prob_from_child / prob_from_parent
    bias_in/out    : (N, D) edge biases
    gate_w         : (D, 3) gate weights, columns [in, out, loop]
    gate_b         : (N, 3) gate biases
    """
    N = adj_in.shape[0]
    D = bias_in.shape[1]
    B = batch
    f32 = jnp.float32
    mdt = jnp.dtype(mxu_dtype)

    # --- blocking ------------------------------------------------------------
    sub = 16 if mdt.itemsize == 2 else 8          # sublane tile for the MXU dtype
    if k_block is None:
        N_pad = _round_up(N, sub)
        Nk = N_pad                                # single contraction step
    else:
        # K tiles the adjacency along lanes -> must be a multiple of 128.
        assert k_block % 128 == 0, "k_block must be a multiple of 128"
        N_pad = _round_up(N, k_block)
        Nk = k_block

    if batch_block is None:
        # Smallest Bt with Bt*D a multiple of 128: lane-dense stores/slices and
        # as many 'parallel' batch blocks as possible (v7x second TensorCore).
        Bt = 128 // math.gcd(D, 128)
    else:
        Bt = batch_block
    B_pad = _round_up(B, Bt)
    assert (Bt * D) % 128 == 0 or Bt == B_pad, "batch block must be 128-lane aligned"

    # --- fused adjacency / edge bias ------------------------------------------
    adj_cat = jnp.zeros((2 * N_pad, N_pad), f32)
    adj_cat = adj_cat.at[:N, :N].set(jnp.asarray(adj_in, f32))
    adj_cat = adj_cat.at[N_pad:N_pad + N, :N].set(jnp.asarray(adj_out, f32))
    adj_cat = adj_cat.astype(mdt)

    bias_cat = jnp.zeros((2 * N_pad, D), f32)
    bias_cat = bias_cat.at[:N].set(jnp.asarray(bias_in, f32))
    bias_cat = bias_cat.at[N_pad:N_pad + N].set(jnp.asarray(bias_out, f32))

    # --- compact gate operands -------------------------------------------------
    # Wc[b*D + d, kind*Bt + c] = gate_w[d, kind] * (b == c)
    gw = jnp.asarray(gate_w, f32)
    gate_wc = jnp.einsum("dk,bc->bdkc", gw, jnp.eye(Bt, dtype=f32))
    gate_wc = gate_wc.reshape(Bt * D, 3 * Bt).astype(mdt)
    # gb[n, kind*Bt + b] = gate_b[n, kind]
    gate_bc = jnp.repeat(jnp.asarray(gate_b, f32), Bt, axis=1)            # (N, 3*Bt)
    gate_bc = jnp.zeros((N_pad, 3 * Bt), f32).at[:N].set(gate_bc)
    # Lane-broadcast matrix: Bcast[j, j*D + e] = 1
    bcast = jnp.kron(jnp.eye(3 * Bt, dtype=f32), jnp.ones((1, D), f32))   # (3Bt, 3Bt*D)

    static = dict(N=N, D=D, B=B, N_pad=N_pad, Nk=Nk, B_pad=B_pad, Bt=Bt,
                  mxu_dtype=mdt)
    return dict(adj_cat=adj_cat, bias_cat=bias_cat, gate_wc=gate_wc,
                gate_bc=gate_bc, bcast=bcast, static=static)


# ----------------------------------------------------------------------------
# Forward wrappers.
# ----------------------------------------------------------------------------
def hierarchy_gcn_slab(h_slab, params):
    """h_slab: (N_pad, B_pad*D) in the MXU dtype -> (N_pad, B_pad*D) float32."""
    st = params["static"]
    N_pad, D, Nk, B_pad, Bt = st["N_pad"], st["D"], st["Nk"], st["B_pad"], st["Bt"]
    bd = Bt * D
    num_b = B_pad // Bt
    num_k = N_pad // Nk
    itm = st["mxu_dtype"].itemsize
    f32 = jnp.float32

    # VMEM budget: pipeline blocks are double-buffered, scratch is not.
    est = 2 * (N_pad * bd * itm           # h block
               + 2 * N_pad * Nk * itm     # adjacency k tile
               + 2 * N_pad * D * 4        # edge bias
               + bd * 3 * Bt * itm        # compact gate weights
               + N_pad * 3 * Bt * 4       # gate biases
               + 3 * Bt * 3 * bd * 4      # lane-broadcast matrix
               + N_pad * bd * 4)          # output block
    est += 2 * N_pad * bd * 4             # f32 accumulator scratch
    vmem_limit = int(min(64 << 20, max(est + (4 << 20), 16 << 20)))  # v7x-safe cap

    return pl.pallas_call(
        hierarchy_gcn_kernel,
        out_shape=jax.ShapeDtypeStruct((N_pad, B_pad * D), f32),
        grid=(num_b, num_k),
        in_specs=[
            pl.BlockSpec((N_pad, bd), lambda i, k: (0, i)),       # h (resident over k)
            pl.BlockSpec((2 * N_pad, Nk), lambda i, k: (0, k)),   # adjacency k tile
            # Grid-invariant operands (constant index_map => DMA'd once).
            # NOTE: pipeline_mode=pl.Buffered(1) would halve their VMEM if the
            # compiler double-buffers them; left at default for compile safety.
            pl.BlockSpec((2 * N_pad, D), lambda i, k: (0, 0)),
            pl.BlockSpec((bd, 3 * Bt), lambda i, k: (0, 0)),
            pl.BlockSpec((N_pad, 3 * Bt), lambda i, k: (0, 0)),
            pl.BlockSpec((3 * Bt, 3 * bd), lambda i, k: (0, 0)),
        ],
        out_specs=pl.BlockSpec((N_pad, bd), lambda i, k: (0, i)),
        scratch_shapes=[pltpu.VMEM((2 * N_pad, bd), f32)],
        compiler_params=pltpu.CompilerParams(
            dimension_semantics=("parallel", "arbitrary"),
            vmem_limit_bytes=vmem_limit),
    )(h_slab, params["adj_cat"], params["bias_cat"], params["gate_wc"],
      params["gate_bc"], params["bcast"])


def structure_encoder_forward(h, params):
    """HierarchyGCN forward on (B, N, D) features -> (B, N, D) float32.

    The pad/transpose here is plumbing for the (B, N, D) interface only; in a
    full HiAGM encoder keep the (N_pad, B_pad*D) slab layout end-to-end to
    avoid the two extra HBM round-trips (perf-review note).
    """
    st = params["static"]
    B, N, D = h.shape
    assert (B, N, D) == (st["B"], st["N"], st["D"])
    h_nbd = jnp.transpose(h, (1, 0, 2))
    h_nbd = jnp.pad(h_nbd, ((0, st["N_pad"] - N), (0, st["B_pad"] - B), (0, 0)))
    h_slab = h_nbd.reshape(st["N_pad"], st["B_pad"] * D).astype(st["mxu_dtype"])
    out_slab = hierarchy_gcn_slab(h_slab, params)
    out = out_slab.reshape(st["N_pad"], st["B_pad"], D)[:N, :B]
    return jnp.transpose(out, (1, 0, 2))


# ----------------------------------------------------------------------------
# Glue: synthesize a small label hierarchy + deterministic parameters.
# ----------------------------------------------------------------------------
def build_hierarchy(num_labels):
    """Mimics StructureEncoder.__init__: node_prob_from_child / _from_parent."""
    hierarchy = {0: [2, 3, 4], 1: [5, 6, 7]}        # Root -> {0,1}; 0 -> {2,3,4}; 1 -> {5,6,7}
    prob_from_child = np.zeros((num_labels, num_labels), dtype=np.float32)
    prob_from_parent = np.zeros((num_labels, num_labels), dtype=np.float32)
    for p, children in hierarchy.items():
        for c in children:
            prob_from_child[p][c] = 1.0
            prob_from_parent[c][p] = 1.0 / len(children)   # synthetic P(c|p)
    return prob_from_child, prob_from_parent


def row_normalize(mat, eps=1e-8):
    s = mat.sum(axis=1, keepdims=True)
    return mat / (s + eps)


def reference_forward(h, adj_in, adj_out, bias_in, bias_out, gate_w, gate_b):
    gates = jax.nn.sigmoid(jnp.einsum("bnd,dk->bnk", h, gate_w) + gate_b)
    in_m = (jnp.einsum("nm,bmd->bnd", adj_in, h) + bias_in) * gates[..., 0:1]
    out_m = (jnp.einsum("nm,bmd->bnd", adj_out, h) + bias_out) * gates[..., 1:2]
    loop_m = h * gates[..., 2:3]
    return jnp.maximum(in_m + out_m + loop_m, 0.0)


if __name__ == "__main__":
    batch, num_nodes, in_dim = 8, 8, 32
    key = jax.random.PRNGKey(0)
    k_h, k_bi, k_bo, k_gw, k_gb = jax.random.split(key, 5)

    # Label-wise feature inputs (what HierarchyGCN receives).
    h = jax.random.normal(k_h, (batch, num_nodes, in_dim), dtype=jnp.float32)

    prob_from_child, prob_from_parent = build_hierarchy(num_nodes)
    adj_in = jnp.asarray(row_normalize(prob_from_child))     # top-down adjacency
    adj_out = jnp.asarray(row_normalize(prob_from_parent))   # bottom-up adjacency

    bias_in = 0.02 * jax.random.normal(k_bi, (num_nodes, in_dim), dtype=jnp.float32)
    bias_out = 0.02 * jax.random.normal(k_bo, (num_nodes, in_dim), dtype=jnp.float32)
    gate_w = 0.1 * jax.random.normal(k_gw, (in_dim, 3), dtype=jnp.float32)   # [in, out, loop]
    gate_b = 0.1 * jax.random.normal(k_gb, (num_nodes, 3), dtype=jnp.float32)
    gate_b = gate_b.at[:, 2].set(0.0)   # self-loop gate has no bias

    ref = reference_forward(h, adj_in, adj_out, bias_in, bias_out, gate_w, gate_b)

    # (a) f32 MXU path, default blocking: Bt=4 -> two 'parallel' 128-lane batch blocks.
    params32 = prepare_structure_params(adj_in, adj_out, bias_in, bias_out,
                                        gate_w, gate_b, batch)
    out32 = jax.block_until_ready(structure_encoder_forward(h, params32))
    np.testing.assert_allclose(np.asarray(out32), np.asarray(ref), rtol=1e-5, atol=1e-5)

    # (b) bf16 MXU path with K-blocking of the N contraction (pads N to 256,
    #     Nk=128 -> two accumulation steps): exercises the realistic-N path.
    params16 = prepare_structure_params(adj_in, adj_out, bias_in, bias_out,
                                        gate_w, gate_b, batch,
                                        k_block=128, mxu_dtype=jnp.bfloat16)
    out16 = jax.block_until_ready(structure_encoder_forward(h, params16))
    np.testing.assert_allclose(np.asarray(out16), np.asarray(ref), rtol=5e-2, atol=5e-2)

    print("KERNEL_OK")
</pallas_src>

<mosaic_0001>
module attributes {stable_mosaic.version = 11 : i64} {
  func.func @hierarchy_gcn_kernel(%arg0: i32, %arg1: i32, %arg2: memref<8x128xf32, #tpu.memory_space<vmem>>, %arg3: memref<16x8xf32, #tpu.memory_space<vmem>>, %arg4: memref<16x32xf32, #tpu.memory_space<vmem>>, %arg5: memref<128x12xf32, #tpu.memory_space<vmem>>, %arg6: memref<8x12xf32, #tpu.memory_space<vmem>>, %arg7: memref<12x384xf32, #tpu.memory_space<vmem>>, %arg8: memref<8x128xf32, #tpu.memory_space<vmem>>, %arg9: memref<16x128xf32, #tpu.memory_space<vmem>>) attributes {dimension_semantics = [#tpu.dimension_semantics<parallel>, #tpu.dimension_semantics<arbitrary>], iteration_bounds = array<i64: 2, 1>, scalar_prefetch = 0 : i64, scratch_operands = 1 : i64, tpu.core_type = #tpu.core_type<tc>, window_params = [{transform_indices = @transform_0, window_bounds = array<i64: 8, 128>}, {transform_indices = @transform_1, window_bounds = array<i64: 16, 8>}, {pipeline_mode = #tpu.pipeline_mode<synchronous>, transform_indices = @transform_2, window_bounds = array<i64: 16, 32>}, {pipeline_mode = #tpu.pipeline_mode<synchronous>, transform_indices = @transform_3, window_bounds = array<i64: 128, 12>}, {pipeline_mode = #tpu.pipeline_mode<synchronous>, transform_indices = @transform_4, window_bounds = array<i64: 8, 12>}, {pipeline_mode = #tpu.pipeline_mode<synchronous>, transform_indices = @transform_5, window_bounds = array<i64: 12, 384>}, {transform_indices = @transform_6, window_bounds = array<i64: 8, 128>}]} {
    %c0_i32 = arith.constant 0 : i32
    %0 = arith.cmpi eq, %arg1, %c0_i32 : i32
    %1 = arith.extui %0 : i1 to i32
    %c0_i32_0 = arith.constant 0 : i32
    %2 = arith.cmpi ne, %1, %c0_i32_0 : i32
    scf.if %2 {
      %cst_9 = arith.constant 0.000000e+00 : f32
      %15 = vector.broadcast %cst_9 : f32 to vector<16x128xf32>
      %c0_10 = arith.constant 0 : index
      %c0_11 = arith.constant 0 : index
      %16 = vector.load %arg9[%c0_10, %c0_11] : memref<16x128xf32, #tpu.memory_space<vmem>>, vector<16x128xf32>
      tpu.vector_store %arg9[%c0_10, %c0_11], %15 {strides = array<i32>} : memref<16x128xf32, #tpu.memory_space<vmem>>, vector<16x128xf32>,
    } else {
    }
    %c8_i32 = arith.constant 8 : i32
    %3 = arith.muli %arg1, %c8_i32 : i32
    %4 = tpu.assume_multiple %3, 8 : i32
    %5 = arith.index_cast %4 : i32 to index
    %c0 = arith.constant 0 : index
    %6 = vector.load %arg2[%5, %c0] : memref<8x128xf32, #tpu.memory_space<vmem>>, vector<8x128xf32>
    %c0_1 = arith.constant 0 : index
    %c0_2 = arith.constant 0 : index
    %7 = vector.load %arg9[%c0_1, %c0_2] : memref<16x128xf32, #tpu.memory_space<vmem>>, vector<16x128xf32>
    %c0_3 = arith.constant 0 : index
    %c0_4 = arith.constant 0 : index
    %8 = vector.load %arg3[%c0_3, %c0_4] : memref<16x8xf32, #tpu.memory_space<vmem>>, vector<16x8xf32>
    %cst = arith.constant dense<0.000000e+00> : vector<16x128xf32>
    %9 = tpu.matmul %8, %6, %cst {dimension_numbers = #tpu.dot_dimension_numbers<[1], [0], [0], [1], [0, 0, 1, 1], [], []>} : vector<16x8xf32>, vector<8x128xf32>, vector<16x128xf32> -> vector<16x128xf32>
    %10 = arith.addf %7, %9 : vector<16x128xf32>
    %c0_5 = arith.constant 0 : index
    %c0_6 = arith.constant 0 : index
    %11 = vector.load %arg9[%c0_5, %c0_6] : memref<16x128xf32, #tpu.memory_space<vmem>>, vector<16x128xf32>
    tpu.vector_store %arg9[%c0_5, %c0_6], %10 {strides = array<i32>} : memref<16x128xf32, #tpu.memory_space<vmem>>, vector<16x128xf32>,
    %c0_i32_7 = arith.constant 0 : i32
    %12 = arith.cmpi eq, %arg1, %c0_i32_7 : i32
    %13 = arith.extui %12 : i1 to i32
    %c0_i32_8 = arith.constant 0 : i32
    %14 = arith.cmpi ne, %13, %c0_i32_8 : i32
    scf.if %14 {
      %c0_9 = arith.constant 0 : index
      %c0_10 = arith.constant 0 : index
      %15 = vector.load %arg2[%c0_9, %c0_10] : memref<8x128xf32, #tpu.memory_space<vmem>>, vector<8x128xf32>
      %c0_11 = arith.constant 0 : index
      %c0_12 = arith.constant 0 : index
      %16 = vector.load %arg5[%c0_11, %c0_12] : memref<128x12xf32, #tpu.memory_space<vmem>>, vector<128x12xf32>
      %cst_13 = arith.constant dense<0.000000e+00> : vector<8x12xf32>
      %17 = tpu.matmul %15, %16, %cst_13 {dimension_numbers = #tpu.dot_dimension_numbers<[1], [0], [0], [1], [0, 0, 1, 1], [], []>} : vector<8x128xf32>, vector<128x12xf32>, vector<8x12xf32> -> vector<8x12xf32>
      %c0_14 = arith.constant 0 : index
      %c0_15 = arith.constant 0 : index
      %18 = vector.load %arg6[%c0_14, %c0_15] : memref<8x12xf32, #tpu.memory_space<vmem>>, vector<8x12xf32>
      %19 = arith.addf %17, %18 : vector<8x12xf32>
      %20 = arith.negf %19 : vector<8x12xf32>
      %21 = math.exp %20 : vector<8x12xf32>
      %cst_16 = arith.constant 1.000000e+00 : f32
      %22 = vector.broadcast %cst_16 : f32 to vector<8x12xf32>
      %23 = arith.addf %22, %21 : vector<8x12xf32>
      %24 = arith.divf %22, %23 : vector<8x12xf32>
      %c0_17 = arith.constant 0 : index
      %c0_18 = arith.constant 0 : index
      %25 = vector.load %arg7[%c0_17, %c0_18] : memref<12x384xf32, #tpu.memory_space<vmem>>, vector<12x384xf32>
      %cst_19 = arith.constant dense<0.000000e+00> : vector<8x384xf32>
      %26 = tpu.matmul %24, %25, %cst_19 {dimension_numbers = #tpu.dot_dimension_numbers<[1], [0], [0], [1], [0, 0, 1, 1], [], []>} : vector<8x12xf32>, vector<12x384xf32>, vector<8x384xf32> -> vector<8x384xf32>
      %c0_20 = arith.constant 0 : index
      %c0_21 = arith.constant 0 : index
      %27 = vector.load %arg4[%c0_20, %c0_21] : memref<16x32xf32, #tpu.memory_space<vmem>>, vector<16x32xf32>
      %28 = tpu.concatenate %27, %27, %27, %27 in 1 : vector<16x32xf32>, vector<16x32xf32>, vector<16x32xf32>, vector<16x32xf32> -> vector<16x128xf32>
      %c0_22 = arith.constant 0 : index
      %c0_23 = arith.constant 0 : index
      %29 = vector.load %arg9[%c0_22, %c0_23] : memref<16x128xf32, #tpu.memory_space<vmem>>, vector<16x128xf32>
      %30 = arith.addf %29, %28 : vector<16x128xf32>
      %31 = vector.extract_strided_slice %30 {offsets = [0, 0], sizes = [8, 128], strides = [1, 1]} : vector<16x128xf32> to vector<8x128xf32>
      %32 = vector.extract_strided_slice %26 {offsets = [0, 0], sizes = [8, 128], strides = [1, 1]} : vector<8x384xf32> to vector<8x128xf32>
      %33 = arith.mulf %31, %32 : vector<8x128xf32>
      %34 = vector.extract_strided_slice %30 {offsets = [8, 0], sizes = [8, 128], strides = [1, 1]} : vector<16x128xf32> to vector<8x128xf32>
      %35 = vector.extract_strided_slice %26 {offsets = [0, 128], sizes = [8, 128], strides = [1, 1]} : vector<8x384xf32> to vector<8x128xf32>
      %36 = arith.mulf %34, %35 : vector<8x128xf32>
      %37 = arith.addf %33, %36 : vector<8x128xf32>
      %38 = vector.extract_strided_slice %26 {offsets = [0, 256], sizes = [8, 128], strides = [1, 1]} : vector<8x384xf32> to vector<8x128xf32>
      %39 = arith.mulf %15, %38 : vector<8x128xf32>
      %40 = arith.addf %37, %39 : vector<8x128xf32>
      %cst_24 = arith.constant 0.000000e+00 : f32
      %41 = vector.broadcast %cst_24 : f32 to vector<8x128xf32>
      %42 = arith.maximumf %40, %41 : vector<8x128xf32>
      %c0_25 = arith.constant 0 : index
      %c0_26 = arith.constant 0 : index
      %43 = vector.load %arg8[%c0_25, %c0_26] : memref<8x128xf32, #tpu.memory_space<vmem>>, vector<8x128xf32>
      tpu.vector_store %arg8[%c0_25, %c0_26], %42 {strides = array<i32>} : memref<8x128xf32, #tpu.memory_space<vmem>>, vector<8x128xf32>,
    } else {
    }
    return
  }
  func.func @transform_0(%arg0: i32, %arg1: i32) -> (i32, i32) {
    %c0_i32 = arith.constant 0 : i32
    %c0_i32_0 = arith.constant 0 : i32
    return %c0_i32, %arg0 : i32, i32
  }
  func.func @transform_1(%arg0: i32, %arg1: i32) -> (i32, i32) {
    %c0_i32 = arith.constant 0 : i32
    %c0_i32_0 = arith.constant 0 : i32
    return %c0_i32, %arg1 : i32, i32
  }
  func.func @transform_2(%arg0: i32, %arg1: i32) -> (i32, i32) {
    %c0_i32 = arith.constant 0 : i32
    %c0_i32_0 = arith.constant 0 : i32
    %c0_i32_1 = arith.constant 0 : i32
    return %c0_i32, %c0_i32_0 : i32, i32
  }
  func.func @transform_3(%arg0: i32, %arg1: i32) -> (i32, i32) {
    %c0_i32 = arith.constant 0 : i32
    %c0_i32_0 = arith.constant 0 : i32
    %c0_i32_1 = arith.constant 0 : i32
    return %c0_i32, %c0_i32_0 : i32, i32
  }
  func.func @transform_4(%arg0: i32, %arg1: i32) -> (i32, i32) {
    %c0_i32 = arith.constant 0 : i32
    %c0_i32_0 = arith.constant 0 : i32
    %c0_i32_1 = arith.constant 0 : i32
    return %c0_i32, %c0_i32_0 : i32, i32
  }
  func.func @transform_5(%arg0: i32, %arg1: i32) -> (i32, i32) {
    %c0_i32 = arith.constant 0 : i32
    %c0_i32_0 = arith.constant 0 : i32
    %c0_i32_1 = arith.constant 0 : i32
    return %c0_i32, %c0_i32_0 : i32, i32
  }
  func.func @transform_6(%arg0: i32, %arg1: i32) -> (i32, i32) {
    %c0_i32 = arith.constant 0 : i32
    %c0_i32_0 = arith.constant 0 : i32
    return %c0_i32, %arg0 : i32, i32
  }
}

</mosaic_0001>

<bundles_post_ra>
// kernel: tpu_custom_call.1
= control target key start
LH: loop header
LB: loop body
LE: loop exit
PB: predicated region body
PF: predicated region fallthrough
CT: control target
= control target key end

     0   :  { %11 = vsyncpa [#allocation4], 0  ;;  %s991_s0 = inlined_call_operand.vmem [shape: f32[8,256], index: 0, kind: input, shape index: {}]   ;;  %s992_s1 = inlined_call_operand.vmem [shape: f32[16,8], index: 1, kind: input, shape index: {}]   ;;  %s993_s2 = inlined_call_operand.vmem [shape: f32[16,32], index: 2, kind: input, shape index: {}]   ;;  %s994_s3 = inlined_call_operand.vmem [shape: f32[128,12], index: 3, kind: input, shape index: {}]   ;;  %s995_s4 = inlined_call_operand.vmem [shape: f32[8,12], index: 4, kind: input, shape index: {}]   ;;  %s996_s5 = inlined_call_operand.vmem [shape: f32[12,384], index: 5, kind: input, shape index: {}]   ;;  %s997_s6 = inlined_call_operand.hbm [shape: f32[8,256], index: 6, kind: output, shape index: {}]  }
   0x1   :  { %13 = vsyncpa [#allocation4 + $0x1], 0  ;;  %s806_s21 = smov 0   ;;  %s808_s22 = smov 0  }
   0x2   :  { %s810_s23 = smov 0   ;;  %s812_s24 = smov 0  }
   0x3   :  { %s814_s25 = smov 0   ;;  %s816_s26 = smov 0  }
   0x4 LB: > { %s605_s27 = sadd.s32 4294967295, %s766_s26   ;;  %s606_s28 = sadd.s32 4294967294, %s766_s26   ;;  %s766_s26 = sphi %s816_s26, %s19_s26   ;;  %s762_s25 = sphi %s814_s25, %s1004_s25   ;;  %s758_s24 = sphi %s812_s24, %s1003_s24   ;;  %s754_s23 = sphi %s810_s23, %s1002_s23   ;;  %s750_s22 = sphi %s808_s22, %s1001_s22   ;;  %s746_s21 = sphi %s806_s21, %s1000_s21  }
   0x5   : > { %s31_s29 = sadd.s32 1, %s762_s25  ;;  %s174_s30 = sadd.s32 1, %s754_s23 }
   0x6   : > { %p33_p0 = scmp.ge.s32.totalorder %s31_s29, 2  ;;  %p184_p1 = scmp.ne.s32.totalorder %s754_s23, %s750_s22 }
   0x7   : > { %p185_p2 = scmp.eq.s32.totalorder %s605_s27, 1  ;;  %p190_p3 = scmp.ne.s32.totalorder %s750_s22, %s746_s21 }
   0x8   : > { %s1006_s29 = smov (%p33_p0, %s31_s29), 0  ;;  %p191_p5 = scmp.eq.s32.totalorder %s606_s28, 1 }
   0x9   : > { %p846_p4 = por %p185_p2, %p184_p1  ;;  %s171_s8 = ssub.s32 %s762_s25, %s1006_s29 }
   0xa   : > { %p610_p6 = scmp.ge.s32.totalorder %s766_s26, 1  ;;  %p172_p7 = scmp.eq.s32.totalorder %s171_s8, 0 }
   0xb   : > { %p853_p8 = por %p191_p5, %p190_p3  ;;  %p235_p9 = scmp.lt.s32.totalorder %s766_s26, 3 }
   0xc   : > { %s859_s10 = scalar_select %p172_p7, %s754_s23, %s174_s30  }
   0xd   : > { %p236_p10 = pnand %p610_p6, %p235_p9 }
   0xe   : > { %p268_p11 = scmp.lt.s32.totalorder (!%p236_p10), %s758_s24, 1  ;;  %s768_s8 = smov (!%p236_p10), 32  }
   0xf   : > { %239 = sbr.rel (%p236_p10) target bundleno = 357 (0x165), region = 44  ;;  %s769_s13 = smov (!%p236_p10), 64  }
  0x10   : > { %s770_s14 = smov (!%p236_p10), 96   ;;  %s623_s19 = sshll.u32 (!%p236_p10), %s758_s24, 3 }
  0x11   : > { %s516_s28 = scalar_lea.hbm (!%p236_p10), %s997_s6, %s623_s19  ;;  %s708_s16 = scalar_lea.hbm (!%p236_p10), %s997_s6, 16 }
  0x12   : > { %s520_s11 = sshll.u32 (!%p236_p10), %s516_s28, 4  ;;  %s521_s11 = int_to_ptr.hbm [resolvable:$true] %s520_s11 }
  0x13   : > { %s702_s12 = sshra.s32 (!%p236_p10), %s521_s11, 4  ;;  %s703_s12 = int_to_ptr.hbm [resolvable:$true] %s702_s12 }
  0x14   : > { %v342_v0 = vld [vmem:[%s994_s3 + $0x78] sm:$0xff]  ;;  %v341_v1 = vld [vmem:[%s994_s3 + $0x70] sm:$0xff]  ;;  %v340_v2 = vld [vmem:[%s994_s3 + $0x68] sm:$0xff]  ;;  %s269_s17 = scalar_select %p268_p11, %s758_s24, 1  ;;  %vm289_vm0 = vcmask 64512   ;;  %vm393_vm1 = vcmask 1043456  }
  0x15   : > { %344 = vmatpush.msra.mxu1 %v342_v0  ;;  %v339_v3 = vld [vmem:[%s994_s3 + $0x60] sm:$0xff]  ;;  %v338_v4 = vld [vmem:[%s994_s3 + $0x58] sm:$0xff]  ;;  %v337_v6 = vld [vmem:[%s994_s3 + $0x50] sm:$0xff]  ;;  %vm389_vm5 = vcmask 97280   ;;  %vm485_vm7 = vcmask 261120   ;;  %vm488_vm8 = vcmask 523264   ;;  %p709_p1 = scmp.lt.s32.totalorder %s703_s12, %s997_s6 }
  0x16   : > { %s612_s20 = sshll.u32 %s269_s17, 3  ;;  %v336_v7 = vld [vmem:[%s994_s3 + $0x48] sm:$0xff]  ;;  %v335_v8 = vld [vmem:[%s994_s3 + $0x40] sm:$0xff]  ;;  %v334_v9 = vld [vmem:[%s994_s3 + $0x38] sm:$0xff]  ;;  %vm491_vm9 = vcmask 785408   ;;  %s265_s17 = sand.u32 1, %s750_s22  }
  0x17   : > { %345 = vmatpush.msra.mxu1 %v341_v1  ;;  %s271_s30 = scalar_lea.vmem %s991_s0, %s612_s20  ;;  %v333_v10 = vld [vmem:[%s994_s3 + $0x30] sm:$0xff]  ;;  %v332_v11 = vld [vmem:[%s994_s3 + $0x28] sm:$0xff]  ;;  %v331_v12 = vld [vmem:[%s994_s3 + $0x20] sm:$0xff]  ;;  %s611_s18 = sshll.u32 %s265_s17, 3 }
  0x18   : > { %v881_v5 = vld [vmem:[%s271_s30] sm:$0xff]  ;;  %v330_v13 = vld [vmem:[%s994_s3 + $0x18] sm:$0xff]  ;;  %v329_v14 = vld [vmem:[%s994_s3 + $0x10] sm:$0xff]  ;;  %s267_s30 = scalar_lea.vmem [#allocation3], %s611_s18  ;;  %s506_s24 = scalar_lea.sflag [#allocation4], %s265_s17 }
  0x19   : > { %346 = vmatpush.msra.mxu1 %v340_v2  ;;  %311 = vmatpush.msra.mxu0 %v881_v5  ;;  %v328_v15 = vld [vmem:[%s994_s3 + $0x8] sm:$0xff]  ;;  %v327_v16 = vld [vmem:[%s994_s3] sm:$0xff]  ;;  %v386_v18 = vld [vmem:[%s996_s5 + $0x18] sm:$0xf] }
  0x1a   : > { %v287_v17 = vld [vmem:[%s992_s1] sm:$0xff]  ;;  %616 = vmatpush.msk.msra.mxu2 %vm393_vm1, %v386_v18  ;;  %v384_v21 = vld [vmem:[%s996_s5 + $0x8] sm:$0xff]  ;;  %v385_v27 = vld [vmem:[%s996_s5 + $0x10] sm:$0xff] }
  0x1b   : > { %347 = vmatpush.msra.mxu1 %v339_v3  ;;  %v383_v19 = vld [vmem:[%s996_s5] sm:$0xff]  ;;  %613 = vmatmul.msk.f32.vlgmr.msra.gmra.mxu0 %vm289_vm0, %v287_v17  ;;  %v388_v23 = vld [vmem:[%s996_s5 + $0x28] sm:$0xf] }
  0x1c   : > { %v387_v20 = vld [vmem:[%s996_s5 + $0x20] sm:$0xf]  ;;  %418 = vmatpush.msra.mxu2 %v383_v19  ;;  %v288_v25 = vld [vmem:[%s992_s1 + $0x8] sm:$0xff] }
  0x1d   : > { %348 = vmatpush.msra.mxu1 %v338_v4  ;;  %618 = vmatpush.msk.msra.mxu3 %vm393_vm1, %v387_v20  ;;  %v343_v22 = vld [vmem:[%s995_s4] sm:$0xff]  ;;  %v464_v30 = vld [vmem:[%s993_s2 + $0x8] sm:$0xff] }
  0x1e   : > { %v463_v24 = vld [vmem:[%s993_s2] sm:$0xff]  ;;  %620 = vmatpush.msk.msrb.mxu2 %vm393_vm1, %v388_v23 }
  0x1f   : > { %349 = vmatpush.msra.mxu1 %v337_v6  ;;  %438 = vmatpush.msra.mxu3 %v384_v21 }
  0x20   : > { %467 = vrot.lane.b32.xlu0 %v463_v24, %s768_s8  ;;  %473 = vrot.lane.b32.xlu1 %v463_v24, %s769_s13 }
  0x21   : > { %350 = vmatpush.msra.mxu1 %v336_v7  ;;  %458 = vmatpush.msrb.mxu2 %v385_v27 }
  0x22   : > { %479 = vrot.lane.b32.xlu2 %v463_v24, %s770_s14 }
  0x23   : > { %351 = vmatpush.msra.mxu1 %v335_v8  ;;  %614 = vmatmul.msk.f32.gmra.mxu0 %vm289_vm0, %v288_v25 }
  0x25   : > { %352 = vmatpush.msra.mxu1 %v334_v9 }
  0x27   : > { %353 = vmatpush.msra.mxu1 %v333_v10 }
  0x28   : > { %469 = vrot.lane.b32.xlu0 %v464_v30, %s768_s8  ;;  %475 = vrot.lane.b32.xlu1 %v464_v30, %s769_s13  ;;  %s518_s8 = sshll.u32 %s267_s30, 4  ;;  %s704_s13 = scalar_lea.hbm %s703_s12, 8  ;;  %s519_s8 = int_to_ptr.vmem [resolvable:$true] %s518_s8 }
  0x29   : > { %354 = vmatpush.msra.mxu1 %v332_v11  ;;  %p705_p12 = scmp.ne.s32.totalorder %s703_s12, %s704_s13  ;;  %p710_p2 = scmp.lt.s32.totalorder %s708_s16, %s704_s13 }
  0x2a   : > { %481 = vrot.lane.b32.xlu2 %v464_v30, %s770_s14 }
  0x2b   : > { %355 = vmatpush.msra.mxu1 %v331_v12  ;;  %p706_p13 = pnand %p705_p12, %p846_p4  ;;  %p711_p3 = por %p710_p2, %p709_p1 }
  0x2d   : > { %356 = vmatpush.msra.mxu1 %v330_v13  ;;  %p707_p0 = pneg %p706_p13 }
  0x2f   : > { %357 = vmatpush.msra.mxu1 %v329_v14  ;;  %p712_p5 = pnand %p711_p3, %p707_p0 }
  0x31   : > { %358 = vmatpush.msra.mxu1 %v328_v15 }
  0x33   : > { %359 = vmatpush.msra.mxu1 %v327_v16 }
  0x34   : > { %360 = vmatmul.f32.vlgmr.msra.gmra.mxu1 %v881_v5 }
  0x7c   : > { %v480_v45 = vpop.permute.xlu2 %479 }
  0x84   : > { %v482_v52 = vpop.permute.xlu2 %481 }
  0x92   : > { %v468_v43 = vpop.permute.xlu0 %467  ;;  %v474_v44 = vpop.permute.xlu1 %473 }
  0x93   : > { %v486_v50 = vsel %vm485_vm7, %v463_v24, %v468_v43 }
  0x94   : > { %v489_v53 = vsel %vm488_vm8, %v486_v50, %v474_v44 }
  0x95   : > { %v492_v56 = vsel %vm491_vm9, %v489_v53, %v480_v45 }
  0x98   : > { %v313_v46 = vpop.f32.mrf.mxu0 }
  0x99   : > { %v496_v60 = vadd.f32 %v492_v56, %v313_v46 }
  0x9a   : > { %v470_v47 = vpop.permute.xlu0 %469  ;;  %v476_v49 = vpop.permute.xlu1 %475 }
  0x9b   : > { %v487_v48 = vsel %vm485_vm7, %v464_v30, %v470_v47 }
  0x9c   : > { %v490_v51 = vsel %vm488_vm8, %v487_v48, %v476_v49 }
  0x9d   : > { %v493_v55 = vsel %vm491_vm9, %v490_v51, %v482_v52 }
  0xa0   : > { %v316_v54 = vpop.f32.mrf.mxu0 }
  0xa1   : > { %v497_v58 = vadd.f32 %v493_v55, %v316_v54 }
  0xb1   : > { %v361_v26 = vpop.f32.mrf.mxu1 }
  0xb2   : > { %v362_v28 = vadd.f32 %v361_v26, %v343_v22 }
  0xb4   : > { %v615_v29 = vmul.f32 -1.442695, %v362_v28 }
  0xb6   : > { %684 = vpow2.f32 %v615_v29 }
  0xbc   : > { %v685_v31 = vpop.eup %684 }
  0xbd   : > { %v367_v32 = vadd.f32 1.0, %v685_v31 }
  0xbf   : > { %686 = vrcp.f32 %v367_v32  ;;  %v379_v36 = vand.u32 2147483648, %v367_v32  ;;  %v377_v38 = vand.u32 2147483647, %v367_v32  ;;  %vm373_vm3 = vweird.f32 %v367_v32 }
  0xc1   : > { %v380_v40 = vor.u32 1.1754944e-38, %v379_v36  ;;  %vm378_vm6 = vcmp.eq.f32.partialorder %v377_v38, 8.507059e+37 }
  0xc5   : > { %v687_v33 = vpop.eup %686 }
  0xc6   : > { %v369_v34 = vmul.f32 %v687_v33, %v367_v32  ;;  %vm374_vm2 = vweird.f32 %v687_v33 }
  0xc7   : > { %vm375_vm4 = vmor %vm373_vm3, %vm374_vm2 }
  0xc8   : > { %v370_v35 = vsub.f32 1.0, %v369_v34 }
  0xca   : > { %v371_v37 = vmul.f32 %v687_v33, %v370_v35 }
  0xcc   : > { %v372_v39 = vadd.f32 %v687_v33, %v371_v37 }
  0xce   : > { %v376_v41 = vsel %vm375_vm4, %v687_v33, %v372_v39 }
  0xcf   : > { %v381_v42 = vsel %vm378_vm6, %v380_v40, %v376_v41 }
  0xd0   : > { %617 = vmatmul.msk.f32.vlgmr.msra.gmra.mxu2 %vm389_vm5, %v381_v42  ;;  %619 = vmatmul.msk.f32.vlgmr.msra.gmra.mxu3 %vm389_vm5, %v381_v42 }
  0xd8   : > { %621 = vmatmul.msk.f32.vlgmr.msrb.gmra.mxu2 %vm389_vm5, %v381_v42 }
 0x153   : > { %v420_v57 = vpop.f32.mrf.mxu2  ;;  %v440_v59 = vpop.f32.mrf.mxu3 }
 0x154   : > { %v498_v61 = vmul.f32 %v496_v60, %v420_v57  ;;  %v499_v62 = vmul.f32 %v497_v58, %v440_v59 }
 0x156   : > { %v500_v0 = vadd.f32 %v499_v62, %v498_v61 }
 0x15b   : > { %v460_v63 = vpop.f32.mrf.mxu2 }
 0x15c   : > { %v501_v1 = vmul.f32 %v460_v63, %v881_v5 }
 0x15e   : > { %v502_v2 = vadd.f32 %v501_v1, %v500_v0 }
 0x160   : > { %v503_v3 = vmax.f32 %v502_v2, 0.0 }
 0x162   : > { %504 = vst [vmem:[%s267_s30] sm:$0xff] %v503_v3 }
 0x163   : > { %715 = shalt.err (!%p712_p5)
}
 0x164   : > { %626 = dma.vmem_to_hbm [thread:$0]  (%p846_p4), %s519_s8, 128, %s521_s11, %s506_s24  }
 0x165 PF: > { %p632_p6 = scmp.ge.s32.totalorder %s766_s26, 2  ;;  %s532_s17 = sand.u32 1, %s746_s21  }
 0x166   : > { %s533_s20 = scalar_lea.sflag [#allocation4], %s532_s17 }
 0x167   : > { %p629_p7 = pnand %p632_p6, %p853_p8 }
 0x169   : > { %p630_p9 = pneg %p629_p7 }
 0x16b   : > { %741 = dma.done.wait (%p630_p9), %s533_s20, 128  }
 0x16c   : > { %743 = vsyncadd (%p630_p9), %s533_s20, 4294967168  ;;  %s19_s26 = sadd.s32 1, %s766_s26   ;;  %s1000_s21 = smov %s750_s22 }
 0x16d   : > { %p16_p10 = scmp.ge.s32.totalorder %s19_s26, 4   ;;  %s1001_s22 = smov %s754_s23 }
 0x16e   : > { %s1002_s23 = smov %s859_s10  ;;  %s1003_s24 = smov %s762_s25 }
 0x16f   : > { %s1004_s25 = smov %s1006_s29  ;;  %18 = sbr.rel (!%p16_p10) target bundleno = 4 (0x4), region = 91 }
 0x174   :  { %539 = vsyncpa [#allocation4], 1 }
 0x175   :  { %541 = vsyncpa [#allocation4 + $0x1], 1 }

</bundles_post_ra>
